<compile_context>
chip_gen: v6e
topology: v6e:2x2x1
jax: 0.10.0
libtpu: 0.0.40
codegen_flags: <defaults>
</compile_context>

<pallas_src>
import math
from functools import partial

import jax
import jax.numpy as jnp
from jax import lax
from jax.experimental import pallas as pl
from jax.experimental.pallas import tpu as pltpu


# --------------------------------------------------------------------------
# Pallas kernel: fused im2col VALID 2-D convolution + bias, transposed output,
# whole batch tile folded into a single MXU matmul.
# --------------------------------------------------------------------------
def _gconv2d_im2col_kernel(x_ref, w_ref, b_ref, o_ref, *, KH, KW, W, HW):
    # x_ref: (Bt, Cin, H*W + pad)  flat-spatial input (tail-padded), lane = spatial
    # w_ref: (Cout, KH*KW*Cin)     im2col weight slab (resident across grid)
    # b_ref: (Cout, 1)             f32 bias column (broadcasts over lanes)
    # o_ref: (Bt, Cout, H*W)       lane-dense output (H*W multiple of 128);
    #                              rows >= OH / cols >= OW are wrap-around
    #                              garbage and are cropped by the wrapper.
    Bt = x_ref.shape[0]
    w = w_ref[...]                            # (Cout, K), stays resident
    bias = b_ref[...].astype(jnp.float32)     # (Cout, 1)

    # Build one (K, Bt*HW) patch matrix: per image, 9 whole-plane shifted
    # slices concatenated along sublanes; images concatenated along lanes.
    # TODO(synk): at real W (multiple of 128) replace the misaligned tap
    # slices with KW pltpu.roll copies + lane-aligned ky offsets (XLU slot).
    per_image = []
    for b in range(Bt):                       # Bt is tiny: static unroll
        taps = []
        for ky in range(KH):
            for kx in range(KW):
                start = ky * W + kx           # static offset
                taps.append(x_ref[b, :, start:start + HW])      # (Cin, HW)
        per_image.append(jnp.concatenate(taps, axis=0))          # (K, HW)
    patches = per_image[0] if Bt == 1 else jnp.concatenate(per_image, axis=1)

    # ONE MXU matmul for the whole batch tile: (Cout,K) x (K, Bt*HW), f32 acc.
    acc = jnp.dot(w, patches, preferred_element_type=jnp.float32)
    out = (acc + bias).astype(o_ref.dtype)    # single broadcast + cast epilogue

    for b in range(Bt):                       # 128-lane-aligned unmasked stores
        o_ref[b, :, :] = out[:, b * HW:(b + 1) * HW]


def _pick_batch_tile(N):
    # One grid step on 1-TC chips (v5e/v6e: grid is a serial loop, per-step
    # overhead dominates at toy sizes); >=2 steps on v7x (2 TensorCores) so
    # the "parallel" batch axis actually uses both cores.
    n_tc = 1
    try:
        kind = jax.devices()[0].device_kind.lower()
        if "v7" in kind:
            n_tc = 2
    except Exception:
        pass
    steps = n_tc if (n_tc <= N and N % n_tc == 0) else 1
    return N // steps


def conv2d_valid_bias_pallas(x_nchw, w_oihw, bias, *, batch_tile=None,
                             compute_dtype=jnp.float32):
    """Equivalent to F.conv2d(x, w) + bias (stride 1, no padding)."""
    N, Cin, H, W = x_nchw.shape
    Cout, Cin2, KH, KW = w_oihw.shape
    assert Cin == Cin2
    OH, OW = H - KH + 1, W - KW + 1
    HW = H * W                              # per-image lane width (multiple of 128 here)
    K = KH * KW * Cin
    pad = (KH - 1) * W + (KW - 1)           # keeps every tap slice of an HW-wide output in bounds

    if batch_tile is None:
        batch_tile = _pick_batch_tile(N)
    assert N % batch_tile == 0

    # Free reshape (no transpose): NCHW -> (N, Cin, H*W), plus tail pad columns.
    # TODO(synk): at real sizes this pad/cast pre-pass is a full extra HBM
    # round trip of the activation; fuse into the kernel's input DMA instead.
    x_flat = x_nchw.reshape(N, Cin, HW)
    x_flat = jnp.pad(x_flat, ((0, 0), (0, 0), (0, pad))).astype(compute_dtype)

    # Weight slab (Cout, KH*KW*Cin): row c, col (ky*KW+kx)*Cin + ci = w[c, ci, ky, kx].
    w_slab = jnp.transpose(w_oihw, (0, 2, 3, 1)).reshape(Cout, K).astype(compute_dtype)
    b_col = bias.reshape(Cout, 1).astype(jnp.float32)

    kernel = partial(_gconv2d_im2col_kernel, KH=KH, KW=KW, W=W, HW=HW)

    out_flat = pl.pallas_call(
        kernel,
        out_shape=jax.ShapeDtypeStruct((N, Cout, HW), compute_dtype),
        grid_spec=pltpu.PrefetchScalarGridSpec(
            num_scalar_prefetch=0,
            grid=(N // batch_tile,),
            in_specs=[
                pl.BlockSpec((batch_tile, Cin, HW + pad), lambda n: (n, 0, 0)),
                pl.BlockSpec((Cout, K), lambda n: (0, 0)),       # resident weights
                pl.BlockSpec((Cout, 1), lambda n: (0, 0)),       # resident bias
            ],
            out_specs=pl.BlockSpec((batch_tile, Cout, HW), lambda n: (n, 0, 0)),
        ),
        compiler_params=pltpu.CompilerParams(
            dimension_semantics=("parallel",),   # v7x: shard batch across 2 TCs
        ),
    )(x_flat, w_slab, b_col)

    # (N, Cout, H*W) -> (N, Cout, H, W) is a free reshape; crop the garbage
    # wrap-around rows/columns -> NCHW VALID output (N, Cout, OH, OW).
    # TODO(synk): at scale keep the padded layout through the next GFNO op
    # (this crop forces a second HBM copy of the output).
    return out_flat.reshape(N, Cout, H, W)[:, :, :OH, :OW]


# --------------------------------------------------------------------------
# Parameter init + group weight expansion (matches GConv2d.get_weight, default
# config: non-Hermitian, non-spectral, middle layer, no reflection).
# --------------------------------------------------------------------------
def init_gconv2d_params(key, in_channels, out_channels, kernel_size, group_size=4):
    kY = kX = kernel_size
    kw, kb = jax.random.split(key)
    # kaiming_uniform_(a=sqrt(5)) => bound = 1/sqrt(fan_in)
    fan_in_w = 1 * in_channels * group_size * kY * kX
    bw = 1.0 / math.sqrt(fan_in_w)
    Wp = jax.random.uniform(
        kw, (out_channels, 1, in_channels, group_size, kY, kX),
        minval=-bw, maxval=bw, dtype=jnp.float32)
    bb = 1.0 / math.sqrt(out_channels)
    Bp = jax.random.uniform(kb, (1, out_channels, 1, 1),
                            minval=-bb, maxval=bb, dtype=jnp.float32)
    return Wp, Bp


def build_group_weights(Wp, Bp, rt_group_size=4):
    # Wp: (Co, 1, Ci, G, kY, kX) -> conv weight (Co*G, Ci*G, kY, kX), bias (1, Co*G, 1, 1)
    Co, _, Ci, G, kY, kX = Wp.shape
    blocks = [Wp[:, 0]]                                    # (Co, Ci, G, kY, kX)
    for _ in range(1, rt_group_size):
        rot = jnp.rot90(blocks[-1], k=1, axes=(-2, -1))    # rotate filter taps
        rolled = jnp.concatenate([rot[:, :, -1:], rot[:, :, :-1]], axis=2)  # roll group dim
        blocks.append(rolled)
    weights = jnp.stack(blocks, axis=1)                    # (Co, G, Ci, G, kY, kX)
    weights = weights.reshape(Co * G, Ci * G, kY, kX)
    bias = jnp.repeat(Bp, G, axis=1)                       # repeat_interleave over channels
    return weights, bias
    # TODO(synk): Hermitian/spectral (complex-valued), first/last-layer and
    # reflection branches of get_weight() are not exercised by this default
    # config; also cross-check this p4 expansion against PyTorch once.


def gconv2d_forward(x_nchw, Wp, Bp, *, compute_dtype=jnp.float32, batch_tile=None):
    weights, bias = build_group_weights(Wp, Bp)
    return conv2d_valid_bias_pallas(x_nchw, weights, bias,
                                    batch_tile=batch_tile,
                                    compute_dtype=compute_dtype)


# --------------------------------------------------------------------------
if __name__ == "__main__":
    key = jax.random.PRNGKey(0)
    k_x, k_p = jax.random.split(key)

    in_channels, out_channels, kernel_size, G = 4, 4, 3, 4
    N, H, W_sp = 2, 16, 16

    # input carries in_channels * group_size channels (as in GFNO middle layers)
    x = jax.random.normal(k_x, (N, in_channels * G, H, W_sp), dtype=jnp.float32)
    Wp, Bp = init_gconv2d_params(k_p, in_channels, out_channels, kernel_size, G)

    # pure-JAX reference for the same expanded weights
    weights, bias = build_group_weights(Wp, Bp)
    ref = lax.conv_general_dilated(
        x, weights, window_strides=(1, 1), padding="VALID",
        dimension_numbers=("NCHW", "OIHW", "NCHW")) + bias

    # f32 compute path (matches the module's default dtype)
    out = gconv2d_forward(x, Wp, Bp, compute_dtype=jnp.float32)
    out = jax.block_until_ready(out)
    assert out.shape == (N, out_channels * G, H - kernel_size + 1, W_sp - kernel_size + 1)
    assert jnp.allclose(out, ref, rtol=1e-3, atol=1e-3)

    # bf16-input / f32-accumulate / bf16-output fast path (v6e / v7x MXU-native)
    out_bf16 = jax.block_until_ready(
        gconv2d_forward(x, Wp, Bp, compute_dtype=jnp.bfloat16))
    assert jnp.allclose(out_bf16.astype(jnp.float32), ref, rtol=5e-2, atol=5e-2)

    print("KERNEL_OK")
</pallas_src>

<mosaic_0001>
module attributes {stable_mosaic.version = 11 : i64} {
  func.func @_gconv2d_im2col_kernel(%arg0: i32, %arg1: memref<2x16x290xf32, #tpu.memory_space<vmem>>, %arg2: memref<16x144xf32, #tpu.memory_space<vmem>>, %arg3: memref<16x1xf32, #tpu.memory_space<vmem>>, %arg4: memref<2x16x256xf32, #tpu.memory_space<vmem>>) attributes {dimension_semantics = [#tpu.dimension_semantics<parallel>], iteration_bounds = array<i64: 1>, scalar_prefetch = 0 : i64, scratch_operands = 0 : i64, tpu.core_type = #tpu.core_type<tc>, window_params = [{transform_indices = @transform_0, window_bounds = array<i64: 2, 16, 290>}, {pipeline_mode = #tpu.pipeline_mode<synchronous>, transform_indices = @transform_1, window_bounds = array<i64: 16, 144>}, {pipeline_mode = #tpu.pipeline_mode<synchronous>, transform_indices = @transform_2, window_bounds = array<i64: 16, 1>}, {transform_indices = @transform_3, window_bounds = array<i64: 2, 16, 256>}]} {
    %c0 = arith.constant 0 : index
    %c0_0 = arith.constant 0 : index
    %0 = vector.load %arg2[%c0, %c0_0] : memref<16x144xf32, #tpu.memory_space<vmem>>, vector<16x144xf32>
    %c0_1 = arith.constant 0 : index
    %c0_2 = arith.constant 0 : index
    %1 = vector.load %arg3[%c0_1, %c0_2] : memref<16x1xf32, #tpu.memory_space<vmem>>, vector<16x1xf32>
    %c0_3 = arith.constant 0 : index
    %c0_4 = arith.constant 0 : index
    %c0_5 = arith.constant 0 : index
    %2 = vector.load %arg1[%c0_3, %c0_4, %c0_5] : memref<2x16x290xf32, #tpu.memory_space<vmem>>, vector<1x16x256xf32>
    %3 = vector.shape_cast %2 : vector<1x16x256xf32> to vector<16x256xf32>
    %c0_6 = arith.constant 0 : index
    %c0_7 = arith.constant 0 : index
    %c1 = arith.constant 1 : index
    %4 = vector.load %arg1[%c0_6, %c0_7, %c1] : memref<2x16x290xf32, #tpu.memory_space<vmem>>, vector<1x16x256xf32>
    %5 = vector.shape_cast %4 : vector<1x16x256xf32> to vector<16x256xf32>
    %c0_8 = arith.constant 0 : index
    %c0_9 = arith.constant 0 : index
    %c2 = arith.constant 2 : index
    %6 = vector.load %arg1[%c0_8, %c0_9, %c2] : memref<2x16x290xf32, #tpu.memory_space<vmem>>, vector<1x16x256xf32>
    %7 = vector.shape_cast %6 : vector<1x16x256xf32> to vector<16x256xf32>
    %c0_10 = arith.constant 0 : index
    %c0_11 = arith.constant 0 : index
    %c16 = arith.constant 16 : index
    %8 = vector.load %arg1[%c0_10, %c0_11, %c16] : memref<2x16x290xf32, #tpu.memory_space<vmem>>, vector<1x16x256xf32>
    %9 = vector.shape_cast %8 : vector<1x16x256xf32> to vector<16x256xf32>
    %c0_12 = arith.constant 0 : index
    %c0_13 = arith.constant 0 : index
    %c17 = arith.constant 17 : index
    %10 = vector.load %arg1[%c0_12, %c0_13, %c17] : memref<2x16x290xf32, #tpu.memory_space<vmem>>, vector<1x16x256xf32>
    %11 = vector.shape_cast %10 : vector<1x16x256xf32> to vector<16x256xf32>
    %c0_14 = arith.constant 0 : index
    %c0_15 = arith.constant 0 : index
    %c18 = arith.constant 18 : index
    %12 = vector.load %arg1[%c0_14, %c0_15, %c18] : memref<2x16x290xf32, #tpu.memory_space<vmem>>, vector<1x16x256xf32>
    %13 = vector.shape_cast %12 : vector<1x16x256xf32> to vector<16x256xf32>
    %c0_16 = arith.constant 0 : index
    %c0_17 = arith.constant 0 : index
    %c32 = arith.constant 32 : index
    %14 = vector.load %arg1[%c0_16, %c0_17, %c32] : memref<2x16x290xf32, #tpu.memory_space<vmem>>, vector<1x16x256xf32>
    %15 = vector.shape_cast %14 : vector<1x16x256xf32> to vector<16x256xf32>
    %c0_18 = arith.constant 0 : index
    %c0_19 = arith.constant 0 : index
    %c33 = arith.constant 33 : index
    %16 = vector.load %arg1[%c0_18, %c0_19, %c33] : memref<2x16x290xf32, #tpu.memory_space<vmem>>, vector<1x16x256xf32>
    %17 = vector.shape_cast %16 : vector<1x16x256xf32> to vector<16x256xf32>
    %c0_20 = arith.constant 0 : index
    %c0_21 = arith.constant 0 : index
    %c34 = arith.constant 34 : index
    %18 = vector.load %arg1[%c0_20, %c0_21, %c34] : memref<2x16x290xf32, #tpu.memory_space<vmem>>, vector<1x16x256xf32>
    %19 = vector.shape_cast %18 : vector<1x16x256xf32> to vector<16x256xf32>
    %20 = tpu.concatenate %3, %5, %7, %9, %11, %13, %15, %17, %19 in 0 : vector<16x256xf32>, vector<16x256xf32>, vector<16x256xf32>, vector<16x256xf32>, vector<16x256xf32>, vector<16x256xf32>, vector<16x256xf32>, vector<16x256xf32>, vector<16x256xf32> -> vector<144x256xf32>
    %c1_22 = arith.constant 1 : index
    %c0_23 = arith.constant 0 : index
    %c0_24 = arith.constant 0 : index
    %21 = vector.load %arg1[%c1_22, %c0_23, %c0_24] : memref<2x16x290xf32, #tpu.memory_space<vmem>>, vector<1x16x256xf32>
    %22 = vector.shape_cast %21 : vector<1x16x256xf32> to vector<16x256xf32>
    %c1_25 = arith.constant 1 : index
    %c0_26 = arith.constant 0 : index
    %c1_27 = arith.constant 1 : index
    %23 = vector.load %arg1[%c1_25, %c0_26, %c1_27] : memref<2x16x290xf32, #tpu.memory_space<vmem>>, vector<1x16x256xf32>
    %24 = vector.shape_cast %23 : vector<1x16x256xf32> to vector<16x256xf32>
    %c1_28 = arith.constant 1 : index
    %c0_29 = arith.constant 0 : index
    %c2_30 = arith.constant 2 : index
    %25 = vector.load %arg1[%c1_28, %c0_29, %c2_30] : memref<2x16x290xf32, #tpu.memory_space<vmem>>, vector<1x16x256xf32>
    %26 = vector.shape_cast %25 : vector<1x16x256xf32> to vector<16x256xf32>
    %c1_31 = arith.constant 1 : index
    %c0_32 = arith.constant 0 : index
    %c16_33 = arith.constant 16 : index
    %27 = vector.load %arg1[%c1_31, %c0_32, %c16_33] : memref<2x16x290xf32, #tpu.memory_space<vmem>>, vector<1x16x256xf32>
    %28 = vector.shape_cast %27 : vector<1x16x256xf32> to vector<16x256xf32>
    %c1_34 = arith.constant 1 : index
    %c0_35 = arith.constant 0 : index
    %c17_36 = arith.constant 17 : index
    %29 = vector.load %arg1[%c1_34, %c0_35, %c17_36] : memref<2x16x290xf32, #tpu.memory_space<vmem>>, vector<1x16x256xf32>
    %30 = vector.shape_cast %29 : vector<1x16x256xf32> to vector<16x256xf32>
    %c1_37 = arith.constant 1 : index
    %c0_38 = arith.constant 0 : index
    %c18_39 = arith.constant 18 : index
    %31 = vector.load %arg1[%c1_37, %c0_38, %c18_39] : memref<2x16x290xf32, #tpu.memory_space<vmem>>, vector<1x16x256xf32>
    %32 = vector.shape_cast %31 : vector<1x16x256xf32> to vector<16x256xf32>
    %c1_40 = arith.constant 1 : index
    %c0_41 = arith.constant 0 : index
    %c32_42 = arith.constant 32 : index
    %33 = vector.load %arg1[%c1_40, %c0_41, %c32_42] : memref<2x16x290xf32, #tpu.memory_space<vmem>>, vector<1x16x256xf32>
    %34 = vector.shape_cast %33 : vector<1x16x256xf32> to vector<16x256xf32>
    %c1_43 = arith.constant 1 : index
    %c0_44 = arith.constant 0 : index
    %c33_45 = arith.constant 33 : index
    %35 = vector.load %arg1[%c1_43, %c0_44, %c33_45] : memref<2x16x290xf32, #tpu.memory_space<vmem>>, vector<1x16x256xf32>
    %36 = vector.shape_cast %35 : vector<1x16x256xf32> to vector<16x256xf32>
    %c1_46 = arith.constant 1 : index
    %c0_47 = arith.constant 0 : index
    %c34_48 = arith.constant 34 : index
    %37 = vector.load %arg1[%c1_46, %c0_47, %c34_48] : memref<2x16x290xf32, #tpu.memory_space<vmem>>, vector<1x16x256xf32>
    %38 = vector.shape_cast %37 : vector<1x16x256xf32> to vector<16x256xf32>
    %39 = tpu.concatenate %22, %24, %26, %28, %30, %32, %34, %36, %38 in 0 : vector<16x256xf32>, vector<16x256xf32>, vector<16x256xf32>, vector<16x256xf32>, vector<16x256xf32>, vector<16x256xf32>, vector<16x256xf32>, vector<16x256xf32>, vector<16x256xf32> -> vector<144x256xf32>
    %40 = tpu.concatenate %20, %39 in 1 : vector<144x256xf32>, vector<144x256xf32> -> vector<144x512xf32>
    %cst = arith.constant dense<0.000000e+00> : vector<16x512xf32>
    %41 = tpu.matmul %0, %40, %cst {dimension_numbers = #tpu.dot_dimension_numbers<[1], [0], [0], [1], [0, 0, 1, 1], [], []>} : vector<16x144xf32>, vector<144x512xf32>, vector<16x512xf32> -> vector<16x512xf32>
    %42 = vector.broadcast %1 : vector<16x1xf32> to vector<16x512xf32>
    %43 = arith.addf %41, %42 : vector<16x512xf32>
    %44 = vector.extract_strided_slice %43 {offsets = [0, 0], sizes = [16, 256], strides = [1, 1]} : vector<16x512xf32> to vector<16x256xf32>
    %c0_49 = arith.constant 0 : index
    %c0_50 = arith.constant 0 : index
    %c0_51 = arith.constant 0 : index
    %45 = vector.load %arg4[%c0_49, %c0_50, %c0_51] : memref<2x16x256xf32, #tpu.memory_space<vmem>>, vector<1x16x256xf32>
    %46 = vector.shape_cast %45 : vector<1x16x256xf32> to vector<16x256xf32>
    %47 = vector.shape_cast %44 : vector<16x256xf32> to vector<1x16x256xf32>
    tpu.vector_store %arg4[%c0_49, %c0_50, %c0_51], %47 {strides = array<i32>} : memref<2x16x256xf32, #tpu.memory_space<vmem>>, vector<1x16x256xf32>,
    %48 = vector.extract_strided_slice %43 {offsets = [0, 256], sizes = [16, 256], strides = [1, 1]} : vector<16x512xf32> to vector<16x256xf32>
    %c1_52 = arith.constant 1 : index
    %c0_53 = arith.constant 0 : index
    %c0_54 = arith.constant 0 : index
    %49 = vector.load %arg4[%c1_52, %c0_53, %c0_54] : memref<2x16x256xf32, #tpu.memory_space<vmem>>, vector<1x16x256xf32>
    %50 = vector.shape_cast %49 : vector<1x16x256xf32> to vector<16x256xf32>
    %51 = vector.shape_cast %48 : vector<16x256xf32> to vector<1x16x256xf32>
    tpu.vector_store %arg4[%c1_52, %c0_53, %c0_54], %51 {strides = array<i32>} : memref<2x16x256xf32, #tpu.memory_space<vmem>>, vector<1x16x256xf32>,
    return
  }
  func.func @transform_0(%arg0: i32) -> (i32, i32, i32) {
    %c0_i32 = arith.constant 0 : i32
    %c0_i32_0 = arith.constant 0 : i32
    %c0_i32_1 = arith.constant 0 : i32
    return %arg0, %c0_i32, %c0_i32_0 : i32, i32, i32
  }
  func.func @transform_1(%arg0: i32) -> (i32, i32) {
    %c0_i32 = arith.constant 0 : i32
    %c0_i32_0 = arith.constant 0 : i32
    %c0_i32_1 = arith.constant 0 : i32
    return %c0_i32, %c0_i32_0 : i32, i32
  }
  func.func @transform_2(%arg0: i32) -> (i32, i32) {
    %c0_i32 = arith.constant 0 : i32
    %c0_i32_0 = arith.constant 0 : i32
    %c0_i32_1 = arith.constant 0 : i32
    return %c0_i32, %c0_i32_0 : i32, i32
  }
  func.func @transform_3(%arg0: i32) -> (i32, i32, i32) {
    %c0_i32 = arith.constant 0 : i32
    %c0_i32_0 = arith.constant 0 : i32
    %c0_i32_1 = arith.constant 0 : i32
    return %arg0, %c0_i32, %c0_i32_0 : i32, i32, i32
  }
}

</mosaic_0001>

<bundles_post_ra>
// kernel: tpu_custom_call.1
= control target key start
LH: loop header
LB: loop body
LE: loop exit
PB: predicated region body
PF: predicated region fallthrough
CT: control target
= control target key end

     0   :  { %8 = vsyncpa [#allocation3], 0  ;;  %s977_s0 = inlined_call_operand.hbm [shape: f32[2,16,290], index: 0, kind: input, shape index: {}]   ;;  %s978_s1 = inlined_call_operand.hbm [shape: f32[16,144], index: 1, kind: input, shape index: {}]   ;;  %s979_s2 = inlined_call_operand.vmem [shape: f32[16,1], index: 2, kind: input, shape index: {}]   ;;  %s980_s3 = inlined_call_operand.hbm [shape: f32[2,16,256], index: 3, kind: output, shape index: {}]  }
   0x1   :  { %9 = vsyncpa [#allocation6], 0 }
   0x2   :  { %10 = vsyncpa [#allocation4], 0  ;;  %s688_s12 = smov [#allocation2]  }
   0x3   :  { %s16_s13 = sshll.u32 %s688_s12, 4  ;;  %s17_s13 = int_to_ptr.vmem [resolvable:$true] %s16_s13 }
   0x4   :  { %s630_s14 = scalar_lea.vmem %s17_s13, 1536  ;;  %p635_p1 = scmp.lt.s32.totalorder %s17_s13, %s17_s13 }
   0x5   :  { %p631_p0 = scmp.ne.s32.totalorder %s17_s13, %s630_s14  ;;  %p636_p2 = scmp.lt.s32.totalorder %s630_s14, %s630_s14 }
   0x7   :  { %p637_p3 = por %p636_p2, %p635_p1 }
   0x9   :  { %p638_p4 = pnand %p637_p3, %p631_p0 }
   0xb   :  { %641 = shalt.err (!%p638_p4)
}
   0xc   :  { %s689_s15 = smov 384   ;;  %s690_s16 = smov 24  }
   0xd   :  { %22 = dma.hbm_to_vmem [thread:$0]  %s977_s0, 1536, %s17_s13, [#allocation3], %s689_s15, %s689_s15, %s690_s16  }
   0xe   :  { %s691_s19 = smov [#allocation5]  }
   0xf   :  { %s28_s20 = sshll.u32 %s691_s19, 4  ;;  %s29_s20 = int_to_ptr.vmem [resolvable:$true] %s28_s20 }
  0x10   :  { %s650_s21 = scalar_lea.vmem %s29_s20, 512  ;;  %p655_p6 = scmp.lt.s32.totalorder %s29_s20, %s29_s20 }
  0x11   :  { %p651_p5 = scmp.ne.s32.totalorder %s29_s20, %s650_s21  ;;  %p656_p7 = scmp.lt.s32.totalorder %s650_s21, %s650_s21 }
  0x13   :  { %p657_p8 = por %p656_p7, %p655_p6 }
  0x15   :  { %p658_p9 = pnand %p657_p8, %p651_p5 }
  0x17   :  { %661 = shalt.err (!%p658_p9)
}
  0x18   :  { %s692_s22 = smov 256   ;;  %s693_s23 = smov 16  }
  0x19   :  { %34 = dma.hbm_to_vmem [thread:$0]  %s978_s1, 512, %s29_s20, [#allocation6], %s692_s22, %s692_s22, %s693_s23  }
  0x1a   :  { %682 = dma.done.wait [#allocation3], 1536  }
  0x1b   :  { %683 = vsyncadd [#allocation3], 4294965760 }
  0x1c   :  { %684 = dma.done.wait [#allocation6], 512  }
  0x1d   :  { %685 = vsyncadd [#allocation6], 4294966784  ;;  %v733_v0 = vld [vmem:[#allocation2 + $0x50] sm:$0xff]  ;;  %v735_v1 = vld [vmem:[#allocation2 + $0x20] sm:$0xff]  ;;  %s694_s0 = smov 95   ;;  %s695_s1 = smov 96  }
  0x1e   :  { %370 = vrot.lane.b32.xlu1 %v733_v0, %s694_s0  ;;  %195 = vrot.lane.b32.xlu0 %v735_v1, %s694_s0  ;;  %v739_v2 = vld [vmem:[#allocation2 + $0x58] sm:$0xff]  ;;  %v741_v3 = vld [vmem:[#allocation2 + $0x28] sm:$0xff]  ;;  %v751_v6 = vld [vmem:[#allocation2 + $0x10] sm:$0xff]  ;;  %s696_s26 = smov 110   ;;  %s697_s27 = smov 111   ;;  %vm199_vm0 = vcmask 777216  }
  0x1f   :  { %v745_v4 = vld [vmem:[#allocation2 + $0x48] sm:$0xff]  ;;  %v747_v5 = vld [vmem:[#allocation2 + $0x18] sm:$0xff]  ;;  %v757_v8 = vld [vmem:[#allocation2 + $0x40] sm:$0xff]  ;;  %s698_s28 = smov 112   ;;  %s699_s29 = smov 126   ;;  %vm178_vm1 = vcmask 785408  }
  0x20   :  { %v753_v7 = vld [vmem:[#allocation2 + $0x8] sm:$0xff]  ;;  %v759_v9 = vld [vmem:[#allocation2 + $0x38] sm:$0xff]  ;;  %v763_v10 = vld [vmem:[#allocation2 + $0x30] sm:$0xff]  ;;  %s700_s30 = smov 127   ;;  %vm157_vm2 = vcmask 900096   ;;  %s701_s4 = smov 94  }
  0x21   :  { %v765_v11 = vld [vmem:[#allocation2] sm:$0xff]  ;;  %vm412_vm3 = vcmask 130048   ;;  %vm136_vm4 = vcmask 908288   ;;  %vm115_vm5 = vcmask 916480   ;;  %vm94_vm6 = vcmask 1031168  }
  0x22   :  { %372 = vrot.lane.b32.xlu1 %v739_v2, %s694_s0  ;;  %197 = vrot.lane.b32.xlu0 %v741_v3, %s694_s0  ;;  %vm73_vm7 = vcmask 1039360   ;;  %vm220_vm8 = vcmask 769024  }
  0x26   :  { %368 = vrot.lane.b32.xlu1 %v745_v4, %s694_s0  ;;  %193 = vrot.lane.b32.xlu0 %v747_v5, %s694_s0 }
  0x2a   :  { %191 = vrot.lane.b32.xlu1 %v751_v6, %s694_s0  ;;  %189 = vrot.lane.b32.xlu0 %v753_v7, %s694_s0 }
  0x2e   :  { %366 = vrot.lane.b32.xlu1 %v757_v8, %s694_s0  ;;  %364 = vrot.lane.b32.xlu0 %v759_v9, %s694_s0 }
  0x32   :  { %362 = vrot.lane.b32.xlu1 %v763_v10, %s694_s0  ;;  %187 = vrot.lane.b32.xlu0 %v765_v11, %s694_s0 }
  0x36   :  { %176 = vrot.lane.b32.xlu1 %v741_v3, %s695_s1  ;;  %174 = vrot.lane.b32.xlu0 %v735_v1, %s695_s1 }
  0x3a   :  { %352 = vrot.lane.b32.xlu1 %v739_v2, %s695_s1  ;;  %350 = vrot.lane.b32.xlu0 %v733_v0, %s695_s1 }
  0x3e   :  { %348 = vrot.lane.b32.xlu1 %v745_v4, %s695_s1  ;;  %172 = vrot.lane.b32.xlu0 %v747_v5, %s695_s1 }
  0x42   :  { %170 = vrot.lane.b32.xlu1 %v751_v6, %s695_s1  ;;  %168 = vrot.lane.b32.xlu0 %v753_v7, %s695_s1 }
  0x46   :  { %346 = vrot.lane.b32.xlu1 %v757_v8, %s695_s1  ;;  %344 = vrot.lane.b32.xlu0 %v759_v9, %s695_s1 }
  0x4a   :  { %342 = vrot.lane.b32.xlu1 %v763_v10, %s695_s1  ;;  %166 = vrot.lane.b32.xlu0 %v765_v11, %s695_s1 }
  0x4e   :  { %155 = vrot.lane.b32.xlu1 %v741_v3, %s696_s26  ;;  %153 = vrot.lane.b32.xlu0 %v735_v1, %s696_s26 }
  0x52   :  { %332 = vrot.lane.b32.xlu1 %v739_v2, %s696_s26  ;;  %330 = vrot.lane.b32.xlu0 %v733_v0, %s696_s26 }
  0x56   :  { %328 = vrot.lane.b32.xlu1 %v745_v4, %s696_s26  ;;  %151 = vrot.lane.b32.xlu0 %v747_v5, %s696_s26 }
  0x5a   :  { %149 = vrot.lane.b32.xlu1 %v751_v6, %s696_s26  ;;  %147 = vrot.lane.b32.xlu0 %v753_v7, %s696_s26 }
  0x5e   :  { %326 = vrot.lane.b32.xlu1 %v757_v8, %s696_s26  ;;  %324 = vrot.lane.b32.xlu0 %v759_v9, %s696_s26 }
  0x62   :  { %322 = vrot.lane.b32.xlu1 %v763_v10, %s696_s26  ;;  %145 = vrot.lane.b32.xlu0 %v765_v11, %s696_s26 }
  0x66   :  { %134 = vrot.lane.b32.xlu1 %v741_v3, %s697_s27  ;;  %132 = vrot.lane.b32.xlu0 %v735_v1, %s697_s27 }
  0x6a   :  { %312 = vrot.lane.b32.xlu1 %v739_v2, %s697_s27  ;;  %310 = vrot.lane.b32.xlu0 %v733_v0, %s697_s27 }
  0x6e   :  { %308 = vrot.lane.b32.xlu1 %v745_v4, %s697_s27  ;;  %130 = vrot.lane.b32.xlu0 %v747_v5, %s697_s27 }
  0x72   :  { %128 = vrot.lane.b32.xlu1 %v751_v6, %s697_s27  ;;  %126 = vrot.lane.b32.xlu0 %v753_v7, %s697_s27 }
  0x76   :  { %306 = vrot.lane.b32.xlu1 %v757_v8, %s697_s27  ;;  %304 = vrot.lane.b32.xlu0 %v759_v9, %s697_s27 }
  0x7a   :  { %302 = vrot.lane.b32.xlu1 %v763_v10, %s697_s27  ;;  %124 = vrot.lane.b32.xlu0 %v765_v11, %s697_s27 }
  0x7e   :  { %113 = vrot.lane.b32.xlu1 %v741_v3, %s698_s28  ;;  %111 = vrot.lane.b32.xlu0 %v735_v1, %s698_s28 }
  0x82   :  { %292 = vrot.lane.b32.xlu1 %v739_v2, %s698_s28  ;;  %290 = vrot.lane.b32.xlu0 %v733_v0, %s698_s28 }
  0x86   :  { %288 = vrot.lane.b32.xlu1 %v745_v4, %s698_s28  ;;  %109 = vrot.lane.b32.xlu0 %v747_v5, %s698_s28 }
  0x8a   :  { %107 = vrot.lane.b32.xlu1 %v751_v6, %s698_s28  ;;  %105 = vrot.lane.b32.xlu0 %v753_v7, %s698_s28 }
  0x8e   :  { %286 = vrot.lane.b32.xlu1 %v757_v8, %s698_s28  ;;  %284 = vrot.lane.b32.xlu0 %v759_v9, %s698_s28 }
  0x90   :  { %v371_v12 = vpop.permute.xlu1 %370  ;;  %v196_v13 = vpop.permute.xlu0 %195 }
  0x92   :  { %282 = vrot.lane.b32.xlu1 %v763_v10, %s698_s28  ;;  %103 = vrot.lane.b32.xlu0 %v765_v11, %s698_s28 }
  0x94   :  { %v373_v14 = vpop.permute.xlu1 %372  ;;  %v198_v15 = vpop.permute.xlu0 %197 }
  0x95   :  { %v377_v16 = vsel %vm199_vm0, %v371_v12, %v373_v14  ;;  %v203_v17 = vsel %vm199_vm0, %v196_v13, %v198_v15 }
  0x96   :  { %496 = vmatprep.subr.mxu1 %v377_v16  ;;  %92 = vrot.lane.b32.xlu1 %v741_v3, %s699_s29 }
  0x97   :  { %419 = vmatprep.subr.mxu0 %v203_v17  ;;  %90 = vrot.lane.b32.xlu0 %v735_v1, %s699_s29 }
  0x98   :  { %v369_v18 = vpop.permute.xlu1 %368  ;;  %v194_v19 = vpop.permute.xlu0 %193 }
  0x99   :  { %v376_v20 = vsel %vm199_vm0, %v369_v18, %v371_v12  ;;  %v202_v21 = vsel %vm199_vm0, %v194_v19, %v196_v13  ;;  %v44_v12 = vld [vmem:[#allocation5 + $0x8] sm:$0xff]  ;;  %v702_v19 = vmov 0  }
  0x9a   :  { %497 = vmatpush1.msra.mxu1 %v376_v20  ;;  %272 = vrot.lane.b32.xlu1 %v739_v2, %s699_s29 }
  0x9b   :  { %420 = vmatpush1.msra.mxu0 %v202_v21  ;;  %270 = vrot.lane.b32.xlu0 %v733_v0, %s699_s29 }
  0x9c   :  { %v192_v22 = vpop.permute.xlu1 %191  ;;  %v190_v23 = vpop.permute.xlu0 %189  ;;  %600 = vmatprep.mubr.msk.f32.mxu0 %vm412_vm3, %v44_v12  ;;  %602 = vmatprep.mubr.msk.f32.mxu1 %vm412_vm3, %v44_v12 }
  0x9d   :  { %v201_v24 = vsel %vm199_vm0, %v190_v23, %v192_v22  ;;  %620 = vset.pattern.permute.xlu0 %v702_v19  ;;  %621 = vset.pattern.permute.xlu1 %v702_v19 }
  0x9e   :  { %268 = vrot.lane.b32.xlu1 %v745_v4, %s699_s29  ;;  %421 = vmatprep.subr.mxu0 %v201_v24  ;;  %v47_v24 = vld [vmem:[%s979_s2] sm:$0xff] }
  0x9f   :  { %88 = vrot.lane.b32.xlu0 %v747_v5, %s699_s29 }
  0xa0   :  { %v367_v25 = vpop.permute.xlu1 %366  ;;  %v365_v26 = vpop.permute.xlu0 %364 }
  0xa1   :  { %v375_v27 = vsel %vm199_vm0, %v365_v26, %v367_v25 }
  0xa2   :  { %86 = vrot.lane.b32.xlu1 %v751_v6, %s699_s29  ;;  %498 = vmatprep.subr.mxu1 %v375_v27 }
  0xa3   :  { %84 = vrot.lane.b32.xlu0 %v753_v7, %s699_s29 }
  0xa4   :  { %v363_v28 = vpop.permute.xlu1 %362  ;;  %v188_v29 = vpop.permute.xlu0 %187 }
  0xa5   :  { %v374_v30 = vsel %vm199_vm0, %v363_v28, %v365_v26  ;;  %v200_v31 = vsel %vm199_vm0, %v188_v29, %v190_v23 }
  0xa6   :  { %266 = vrot.lane.b32.xlu1 %v757_v8, %s699_s29  ;;  %499 = vmatpush1.msra.mxu1 %v374_v30 }
  0xa7   :  { %264 = vrot.lane.b32.xlu0 %v759_v9, %s699_s29  ;;  %422 = vmatpush1.msra.mxu0 %v200_v31 }
  0xa8   :  { %v177_v32 = vpop.permute.xlu1 %176  ;;  %v175_v33 = vpop.permute.xlu0 %174 }
  0xa9   :  { %v182_v34 = vsel %vm178_vm1, %v175_v33, %v177_v32 }
  0xaa   :  { %262 = vrot.lane.b32.xlu1 %v763_v10, %s699_s29  ;;  %423 = vmatprep.subr.mxu0 %v182_v34 }
  0xab   :  { %82 = vrot.lane.b32.xlu0 %v765_v11, %s699_s29 }
  0xac   :  { %v353_v35 = vpop.permute.xlu1 %352  ;;  %v351_v36 = vpop.permute.xlu0 %350 }
  0xad   :  { %v357_v37 = vsel %vm178_vm1, %v351_v36, %v353_v35 }
  0xae   :  { %71 = vrot.lane.b32.xlu1 %v741_v3, %s700_s30  ;;  %500 = vmatprep.subr.mxu1 %v357_v37 }
  0xaf   :  { %69 = vrot.lane.b32.xlu0 %v735_v1, %s700_s30 }
  0xb0   :  { %v349_v38 = vpop.permute.xlu1 %348  ;;  %v173_v39 = vpop.permute.xlu0 %172 }
  0xb1   :  { %v181_v40 = vsel %vm178_vm1, %v173_v39, %v175_v33  ;;  %v356_v41 = vsel %vm178_vm1, %v349_v38, %v351_v36 }
  0xb2   :  { %252 = vrot.lane.b32.xlu1 %v739_v2, %s700_s30  ;;  %424 = vmatpush1.msra.mxu0 %v181_v40 }
  0xb3   :  { %250 = vrot.lane.b32.xlu0 %v733_v0, %s700_s30  ;;  %501 = vmatpush1.msra.mxu1 %v356_v41 }
  0xb4   :  { %v171_v42 = vpop.permute.xlu1 %170  ;;  %v169_v43 = vpop.permute.xlu0 %168 }
  0xb5   :  { %v180_v44 = vsel %vm178_vm1, %v169_v43, %v171_v42 }
  0xb6   :  { %248 = vrot.lane.b32.xlu1 %v745_v4, %s700_s30  ;;  %425 = vmatprep.subr.mxu0 %v180_v44 }
  0xb7   :  { %67 = vrot.lane.b32.xlu0 %v747_v5, %s700_s30 }
  0xb8   :  { %v347_v45 = vpop.permute.xlu1 %346  ;;  %v345_v46 = vpop.permute.xlu0 %344 }
  0xb9   :  { %v355_v47 = vsel %vm178_vm1, %v345_v46, %v347_v45 }
  0xba   :  { %65 = vrot.lane.b32.xlu1 %v751_v6, %s700_s30  ;;  %502 = vmatprep.subr.mxu1 %v355_v47 }
  0xbb   :  { %63 = vrot.lane.b32.xlu0 %v753_v7, %s700_s30 }
  0xbc   :  { %v343_v48 = vpop.permute.xlu1 %342  ;;  %v167_v49 = vpop.permute.xlu0 %166 }
  0xbd   :  { %v179_v50 = vsel %vm178_vm1, %v167_v49, %v169_v43  ;;  %v354_v51 = vsel %vm178_vm1, %v343_v48, %v345_v46 }
  0xbe   :  { %246 = vrot.lane.b32.xlu1 %v757_v8, %s700_s30  ;;  %426 = vmatpush1.msra.mxu0 %v179_v50 }
  0xbf   :  { %244 = vrot.lane.b32.xlu0 %v759_v9, %s700_s30  ;;  %503 = vmatpush1.msra.mxu1 %v354_v51 }
  0xc0   :  { %v156_v52 = vpop.permute.xlu1 %155  ;;  %v154_v53 = vpop.permute.xlu0 %153 }
  0xc1   :  { %v161_v54 = vsel %vm157_vm2, %v154_v53, %v156_v52 }
  0xc2   :  { %242 = vrot.lane.b32.xlu1 %v763_v10, %s700_s30  ;;  %427 = vmatprep.subr.mxu0 %v161_v54 }
  0xc3   :  { %61 = vrot.lane.b32.xlu0 %v765_v11, %s700_s30 }
  0xc4   :  { %v333_v55 = vpop.permute.xlu1 %332  ;;  %v331_v56 = vpop.permute.xlu0 %330 }
  0xc5   :  { %v337_v57 = vsel %vm157_vm2, %v331_v56, %v333_v55 }
  0xc6   :  { %218 = vrot.lane.b32.xlu1 %v741_v3, %s701_s4  ;;  %504 = vmatprep.subr.mxu1 %v337_v57 }
  0xc7   :  { %216 = vrot.lane.b32.xlu0 %v735_v1, %s701_s4 }
  0xc8   :  { %v329_v58 = vpop.permute.xlu1 %328  ;;  %v152_v59 = vpop.permute.xlu0 %151 }
  0xc9   :  { %v160_v60 = vsel %vm157_vm2, %v152_v59, %v154_v53  ;;  %v336_v61 = vsel %vm157_vm2, %v329_v58, %v331_v56 }
  0xca   :  { %392 = vrot.lane.b32.xlu1 %v739_v2, %s701_s4  ;;  %428 = vmatpush1.msra.mxu0 %v160_v60 }
  0xcb   :  { %390 = vrot.lane.b32.xlu0 %v733_v0, %s701_s4  ;;  %505 = vmatpush1.msra.mxu1 %v336_v61 }
  0xcc   :  { %v150_v62 = vpop.permute.xlu1 %149  ;;  %v148_v63 = vpop.permute.xlu0 %147 }
  0xcd   :  { %v159_v3 = vsel %vm157_vm2, %v148_v63, %v150_v62 }
  0xce   :  { %388 = vrot.lane.b32.xlu1 %v745_v4, %s701_s4  ;;  %429 = vmatprep.subr.mxu0 %v159_v3 }
  0xcf   :  { %214 = vrot.lane.b32.xlu0 %v747_v5, %s701_s4 }
  0xd0   :  { %v327_v2 = vpop.permute.xlu1 %326  ;;  %v325_v13 = vpop.permute.xlu0 %324 }
  0xd1   :  { %v335_v14 = vsel %vm157_vm2, %v325_v13, %v327_v2 }
  0xd2   :  { %212 = vrot.lane.b32.xlu1 %v751_v6, %s701_s4  ;;  %506 = vmatprep.subr.mxu1 %v335_v14 }
  0xd3   :  { %210 = vrot.lane.b32.xlu0 %v753_v7, %s701_s4 }
  0xd4   :  { %v323_v15 = vpop.permute.xlu1 %322  ;;  %v146_v16 = vpop.permute.xlu0 %145 }
  0xd5   :  { %v158_v17 = vsel %vm157_vm2, %v146_v16, %v148_v63  ;;  %v334_v18 = vsel %vm157_vm2, %v323_v15, %v325_v13 }
  0xd6   :  { %386 = vrot.lane.b32.xlu1 %v757_v8, %s701_s4  ;;  %430 = vmatpush1.msra.mxu0 %v158_v17  ;;  %v48_v8 = vld [vmem:[%s979_s2 + $0x8] sm:$0xff]  ;;  %s703_s2 = smov [#allocation7]  }
  0xd7   :  { %384 = vrot.lane.b32.xlu0 %v759_v9, %s701_s4  ;;  %507 = vmatpush1.msra.mxu1 %v334_v18  ;;  %s587_s9 = sshll.u32 %s703_s2, 4  ;;  %s588_s9 = int_to_ptr.vmem [resolvable:$true] %s587_s9 }
  0xd8   :  { %v135_v6 = vpop.permute.xlu1 %134  ;;  %v133_v20 = vpop.permute.xlu0 %132  ;;  %s662_s10 = scalar_lea.vmem %s588_s9, 1024  ;;  %p667_p11 = scmp.lt.s32.totalorder %s588_s9, %s588_s9 }
  0xd9   :  { %v140_v21 = vsel %vm136_vm4, %v133_v20, %v135_v6  ;;  %p663_p10 = scmp.ne.s32.totalorder %s588_s9, %s662_s10  ;;  %p668_p12 = scmp.lt.s32.totalorder %s662_s10, %s662_s10 }
  0xda   :  { %382 = vrot.lane.b32.xlu1 %v763_v10, %s701_s4  ;;  %431 = vmatprep.subr.mxu0 %v140_v21 }
  0xdb   :  { %208 = vrot.lane.b32.xlu0 %v765_v11, %s701_s4  ;;  %p669_p13 = por %p668_p12, %p667_p11 }
  0xdc   :  { %v313_v22 = vpop.permute.xlu1 %312  ;;  %v311_v23 = vpop.permute.xlu0 %310 }
  0xdd   :  { %v317_v25 = vsel %vm136_vm4, %v311_v23, %v313_v22  ;;  %p670_p0 = pnand %p669_p13, %p663_p10 }
  0xde   :  { %508 = vmatprep.subr.mxu1 %v317_v25  ;;  %409 = vperm.xlu1 %621, %v48_v8  }
  0xdf   :  { %404 = vperm.xlu0 %620, %v47_v24  }
  0xe0   :  { %v309_v26 = vpop.permute.xlu1 %308  ;;  %v131_v27 = vpop.permute.xlu0 %130 }
  0xe1   :  { %v139_v28 = vsel %vm136_vm4, %v131_v27, %v133_v20  ;;  %v316_v29 = vsel %vm136_vm4, %v309_v26, %v311_v23 }
  0xe2   :  { %432 = vmatpush1.msra.mxu0 %v139_v28  ;;  %509 = vmatpush1.msra.mxu1 %v316_v29 }
  0xe4   :  { %v129_v30 = vpop.permute.xlu1 %128  ;;  %v127_v31 = vpop.permute.xlu0 %126 }
  0xe5   :  { %v138_v32 = vsel %vm136_vm4, %v127_v31, %v129_v30 }
  0xe6   :  { %433 = vmatprep.subr.mxu0 %v138_v32 }
  0xe8   :  { %v307_v33 = vpop.permute.xlu1 %306  ;;  %v305_v34 = vpop.permute.xlu0 %304 }
  0xe9   :  { %v315_v35 = vsel %vm136_vm4, %v305_v34, %v307_v33 }
  0xea   :  { %510 = vmatprep.subr.mxu1 %v315_v35 }
  0xec   :  { %v303_v36 = vpop.permute.xlu1 %302  ;;  %v125_v37 = vpop.permute.xlu0 %124 }
  0xed   :  { %v137_v38 = vsel %vm136_vm4, %v125_v37, %v127_v31  ;;  %v314_v39 = vsel %vm136_vm4, %v303_v36, %v305_v34 }
  0xee   :  { %434 = vmatpush1.msra.mxu0 %v137_v38  ;;  %511 = vmatpush1.msra.mxu1 %v314_v39 }
  0xf0   :  { %v114_v40 = vpop.permute.xlu1 %113  ;;  %v112_v41 = vpop.permute.xlu0 %111 }
  0xf1   :  { %v119_v42 = vsel %vm115_vm5, %v112_v41, %v114_v40 }
  0xf2   :  { %435 = vmatprep.subr.mxu0 %v119_v42 }
  0xf4   :  { %v293_v43 = vpop.permute.xlu1 %292  ;;  %v291_v44 = vpop.permute.xlu0 %290 }
  0xf5   :  { %v297_v45 = vsel %vm115_vm5, %v291_v44, %v293_v43 }
  0xf6   :  { %512 = vmatprep.subr.mxu1 %v297_v45 }
  0xf8   :  { %v289_v46 = vpop.permute.xlu1 %288  ;;  %v110_v47 = vpop.permute.xlu0 %109 }
  0xf9   :  { %v118_v48 = vsel %vm115_vm5, %v110_v47, %v112_v41  ;;  %v296_v49 = vsel %vm115_vm5, %v289_v46, %v291_v44 }
  0xfa   :  { %436 = vmatpush1.msra.mxu0 %v118_v48  ;;  %513 = vmatpush1.msra.mxu1 %v296_v49 }
  0xfc   :  { %v108_v50 = vpop.permute.xlu1 %107  ;;  %v106_v51 = vpop.permute.xlu0 %105 }
  0xfd   :  { %v117_v52 = vsel %vm115_vm5, %v106_v51, %v108_v50 }
  0xfe   :  { %437 = vmatprep.subr.mxu0 %v117_v52 }
 0x100   :  { %v287_v53 = vpop.permute.xlu1 %286  ;;  %v285_v54 = vpop.permute.xlu0 %284 }
 0x101   :  { %v295_v55 = vsel %vm115_vm5, %v285_v54, %v287_v53  ;;  %v43_v53 = vld [vmem:[#allocation5] sm:$0xff] }
 0x102   :  { %514 = vmatprep.subr.mxu1 %v295_v55 }
 0x104   :  { %v283_v56 = vpop.permute.xlu1 %282  ;;  %v104_v57 = vpop.permute.xlu0 %103 }
 0x105   :  { %v116_v58 = vsel %vm115_vm5, %v104_v57, %v106_v51  ;;  %v294_v59 = vsel %vm115_vm5, %v283_v56, %v285_v54  ;;  %v46_v56 = vld [vmem:[#allocation5 + $0x18] sm:$0xff] }
 0x106   :  { %438 = vmatpush1.msra.mxu0 %v116_v58  ;;  %515 = vmatpush1.msra.mxu1 %v294_v59  ;;  %v45_v58 = vld [vmem:[#allocation5 + $0x10] sm:$0xff] }
 0x108   :  { %v93_v60 = vpop.permute.xlu1 %92 }
 0x109   :  { %v91_v61 = vpop.permute.xlu0 %90 }
 0x10a   :  { %v98_v62 = vsel %vm94_vm6, %v91_v61, %v93_v60 }
 0x10b   :  { %439 = vmatprep.subr.mxu0 %v98_v62 }
 0x10c   :  { %v273_v63 = vpop.permute.xlu1 %272 }
 0x10d   :  { %v271_v3 = vpop.permute.xlu0 %270 }
 0x10e   :  { %v277_v12 = vsel %vm94_vm6, %v271_v3, %v273_v63 }
 0x10f   :  { %516 = vmatprep.subr.mxu1 %v277_v12 }
 0x110   :  { %v269_v2 = vpop.permute.xlu1 %268 }
 0x111   :  { %v89_v13 = vpop.permute.xlu0 %88  ;;  %v276_v14 = vsel %vm94_vm6, %v269_v2, %v271_v3 }
 0x112   :  { %v97_v15 = vsel %vm94_vm6, %v89_v13, %v91_v61  ;;  %517 = vmatpush1.msra.mxu1 %v276_v14 }
 0x113   :  { %440 = vmatpush1.msra.mxu0 %v97_v15 }
 0x114   :  { %v87_v16 = vpop.permute.xlu1 %86 }
 0x115   :  { %v85_v17 = vpop.permute.xlu0 %84 }
 0x116   :  { %v96_v18 = vsel %vm94_vm6, %v85_v17, %v87_v16 }
 0x117   :  { %441 = vmatprep.subr.mxu0 %v96_v18 }
 0x118   :  { %v267_v19 = vpop.permute.xlu1 %266 }
 0x119   :  { %v265_v6 = vpop.permute.xlu0 %264 }
 0x11a   :  { %v275_v20 = vsel %vm94_vm6, %v265_v6, %v267_v19 }
 0x11b   :  { %518 = vmatprep.subr.mxu1 %v275_v20 }
 0x11c   :  { %v263_v21 = vpop.permute.xlu1 %262 }
 0x11d   :  { %v83_v8 = vpop.permute.xlu0 %82  ;;  %v274_v22 = vsel %vm94_vm6, %v263_v21, %v265_v6 }
 0x11e   :  { %v95_v23 = vsel %vm94_vm6, %v83_v8, %v85_v17  ;;  %519 = vmatpush1.msra.mxu1 %v274_v22 }
 0x11f   :  { %442 = vmatpush1.msra.mxu0 %v95_v23 }
 0x120   :  { %v72_v24 = vpop.permute.xlu1 %71 }
 0x121   :  { %v70_v25 = vpop.permute.xlu0 %69 }
 0x122   :  { %v77_v26 = vsel %vm73_vm7, %v70_v25, %v72_v24 }
 0x123   :  { %443 = vmatprep.subr.mxu0 %v77_v26 }
 0x124   :  { %v253_v27 = vpop.permute.xlu1 %252 }
 0x125   :  { %v251_v28 = vpop.permute.xlu0 %250 }
 0x126   :  { %v257_v29 = vsel %vm73_vm7, %v251_v28, %v253_v27 }
 0x127   :  { %520 = vmatprep.subr.mxu1 %v257_v29 }
 0x128   :  { %v249_v30 = vpop.permute.xlu1 %248 }
 0x129   :  { %v68_v31 = vpop.permute.xlu0 %67  ;;  %v256_v32 = vsel %vm73_vm7, %v249_v30, %v251_v28 }
 0x12a   :  { %v76_v33 = vsel %vm73_vm7, %v68_v31, %v70_v25  ;;  %521 = vmatpush1.msra.mxu1 %v256_v32 }
 0x12b   :  { %444 = vmatpush1.msra.mxu0 %v76_v33 }
 0x12c   :  { %v66_v34 = vpop.permute.xlu1 %65 }
 0x12d   :  { %v64_v35 = vpop.permute.xlu0 %63 }
 0x12e   :  { %v75_v36 = vsel %vm73_vm7, %v64_v35, %v66_v34 }
 0x12f   :  { %445 = vmatprep.subr.mxu0 %v75_v36 }
 0x130   :  { %v247_v37 = vpop.permute.xlu1 %246 }
 0x131   :  { %v245_v38 = vpop.permute.xlu0 %244 }
 0x132   :  { %v255_v39 = vsel %vm73_vm7, %v245_v38, %v247_v37 }
 0x133   :  { %522 = vmatprep.subr.mxu1 %v255_v39 }
 0x134   :  { %v243_v40 = vpop.permute.xlu1 %242 }
 0x135   :  { %v62_v41 = vpop.permute.xlu0 %61  ;;  %v254_v42 = vsel %vm73_vm7, %v243_v40, %v245_v38 }
 0x136   :  { %v74_v43 = vsel %vm73_vm7, %v62_v41, %v64_v35  ;;  %523 = vmatpush1.msra.mxu1 %v254_v42 }
 0x137   :  { %446 = vmatpush1.msra.mxu0 %v74_v43  ;;  %524 = vmatprep.subr.mxu1 %v733_v0 }
 0x138   :  { %447 = vmatprep.subr.mxu0 %v735_v1  ;;  %v219_v44 = vpop.permute.xlu1 %218  ;;  %525 = vmatpush1.msra.mxu1 %v745_v4 }
 0x139   :  { %448 = vmatpush1.msra.mxu0 %v747_v5  ;;  %v217_v45 = vpop.permute.xlu0 %216  ;;  %526 = vmatprep.subr.mxu1 %v759_v9 }
 0x13a   :  { %449 = vmatprep.subr.mxu0 %v753_v7  ;;  %v224_v46 = vsel %vm220_vm8, %v217_v45, %v219_v44  ;;  %527 = vmatpush1.msra.mxu1 %v763_v10 }
 0x13b   :  { %450 = vmatpush1.msra.mxu0 %v765_v11 }
 0x13c   :  { %479 = vmatprep.subr.mxu0 %v224_v46  ;;  %v393_v0 = vpop.permute.xlu1 %392 }
 0x13d   :  { %v391_v47 = vpop.permute.xlu0 %390 }
 0x13e   :  { %v397_v1 = vsel %vm220_vm8, %v391_v47, %v393_v0 }
 0x13f   :  { %556 = vmatprep.subr.mxu1 %v397_v1 }
 0x140   :  { %v389_v4 = vpop.permute.xlu1 %388 }
 0x141   :  { %v215_v48 = vpop.permute.xlu0 %214  ;;  %v396_v5 = vsel %vm220_vm8, %v389_v4, %v391_v47 }
 0x142   :  { %v223_v9 = vsel %vm220_vm8, %v215_v48, %v217_v45  ;;  %557 = vmatpush2.msra.mxu1 %v396_v5 }
 0x143   :  { %480 = vmatpush2.msra.mxu0 %v223_v9 }
 0x144   :  { %v213_v7 = vpop.permute.xlu1 %212 }
 0x145   :  { %v211_v49 = vpop.permute.xlu0 %210 }
 0x146   :  { %v222_v10 = vsel %vm220_vm8, %v211_v49, %v213_v7 }
 0x147   :  { %481 = vmatprep.subr.mxu0 %v222_v10 }
 0x148   :  { %v387_v11 = vpop.permute.xlu1 %386 }
 0x149   :  { %v385_v50 = vpop.permute.xlu0 %384 }
 0x14a   :  { %v395_v51 = vsel %vm220_vm8, %v385_v50, %v387_v11 }
 0x14b   :  { %558 = vmatprep.subr.mxu1 %v395_v51 }
 0x14c   :  { %v383_v52 = vpop.permute.xlu1 %382 }
 0x14d   :  { %v209_v54 = vpop.permute.xlu0 %208  ;;  %v394_v55 = vsel %vm220_vm8, %v383_v52, %v385_v50 }
 0x14e   :  { %v221_v57 = vsel %vm220_vm8, %v209_v54, %v211_v49  ;;  %559 = vmatpush2.msra.mxu1 %v394_v55 }
 0x14f   :  { %482 = vmatpush2.msra.mxu0 %v221_v57  ;;  %561 = vmatmul.mubr.f32.vlgmr.msra.gmra.mxu1 %v43_v53 }
 0x150   :  { %484 = vmatmul.mubr.f32.vlgmr.msra.gmra.mxu0 %v43_v53  ;;  %603 = vmatprep.mubr.msk.f32.mxu1 %vm412_vm3, %v46_v56 }
 0x151   :  { %601 = vmatprep.mubr.msk.f32.mxu0 %vm412_vm3, %v46_v56 }
 0x153   :  { %567 = vmatmul.mubr.f32.gmra.mxu1 %v45_v58 }
 0x154   :  { %490 = vmatmul.mubr.f32.gmra.mxu0 %v45_v58 }
 0x159   :  { %v410_v12 = vpop.permute.xlu1 %409 }
 0x15a   :  { %v405_v59 = vpop.permute.xlu0 %404 }
 0x20f   :  { %v562_v60 = vpop.f32.mrf.mxu1 }
 0x210   :  { %v485_v61 = vpop.f32.mrf.mxu0  ;;  %v563_v62 = vadd.f32 %v562_v60, %v405_v59 }
 0x211   :  { %v486_v63 = vadd.f32 %v485_v61, %v405_v59  ;;  %v564_v3 = vpop.f32.mrf.mxu1 }
 0x212   :  { %578 = vst [vmem:[#allocation7 + $0x20] sm:$0xff] %v563_v62  ;;  %v487_v2 = vpop.f32.mrf.mxu0  ;;  %v565_v13 = vadd.f32 %v564_v3, %v405_v59 }
 0x213   :  { %573 = vst [vmem:[#allocation7] sm:$0xff] %v486_v63  ;;  %v488_v14 = vadd.f32 %v487_v2, %v405_v59  ;;  %v568_v15 = vpop.f32.mrf.mxu1 }
 0x214   :  { %579 = vst [vmem:[#allocation7 + $0x28] sm:$0xff] %v565_v13  ;;  %v491_v16 = vpop.f32.mrf.mxu0  ;;  %v569_v17 = vadd.f32 %v568_v15, %v410_v12 }
 0x215   :  { %574 = vst [vmem:[#allocation7 + $0x8] sm:$0xff] %v488_v14  ;;  %v492_v18 = vadd.f32 %v491_v16, %v410_v12  ;;  %v570_v19 = vpop.f32.mrf.mxu1 }
 0x216   :  { %580 = vst [vmem:[#allocation7 + $0x30] sm:$0xff] %v569_v17  ;;  %v493_v6 = vpop.f32.mrf.mxu0  ;;  %v571_v20 = vadd.f32 %v570_v19, %v410_v12 }
 0x217   :  { %575 = vst [vmem:[#allocation7 + $0x10] sm:$0xff] %v492_v18  ;;  %v494_v21 = vadd.f32 %v493_v6, %v410_v12 }
 0x218   :  { %581 = vst [vmem:[#allocation7 + $0x38] sm:$0xff] %v571_v20 }
 0x219   :  { %576 = vst [vmem:[#allocation7 + $0x18] sm:$0xff] %v494_v21 }
 0x21a   :  { %673 = shalt.err (!%p670_p0)
}
 0x21b   :  { %593 = dma.vmem_to_hbm [thread:$0]  %s588_s9, 1024, %s980_s3, [#allocation4], %s692_s22, %s692_s22, %s693_s23  }
 0x21c   :  { %686 = dma.done.wait [#allocation4], 1024  }
 0x21d   :  { %687 = vsyncadd [#allocation4], 4294966272 }
 0x21e   :  { %597 = vsyncpa [#allocation3], 1 }
 0x21f   :  { %598 = vsyncpa [#allocation6], 1 }
 0x220   :  { %599 = vsyncpa [#allocation4], 1 }

</bundles_post_ra>
